<compile_context>
chip_gen: v7x
topology: tpu7x:2x2x1
jax: 0.10.0
libtpu: 0.0.40
codegen_flags: <defaults>
</compile_context>

<pallas_src>
import jax
import jax.numpy as jnp
from jax.experimental import pallas as pl
from jax.experimental.pallas import tpu as pltpu

IN_DIM = 100      # latent dim
HID_DIM = 200     # real hidden width (LayerNorm width)
HID_PAD = 256     # lane-padded hidden width (zero columns 200..255)
OUT_DIM = 784     # image pixels
LN_EPS = 1e-5
LEAKY_SLOPE = 0.02


def _round_up(n, m):
    return ((n + m - 1) // m) * m


def generator_kernel(x_ref, w1_ref, b1_ref, w2_ref, b2_ref, o_ref):
    """One batch tile: Linear -> LeakyReLU -> LayerNorm (affine pre-folded
    into W2'/b2') -> Linear -> Sigmoid. Hidden dim is zero-padded to 256;
    LN stats use only the real 200 lanes and the padded W2' rows are zero."""
    # ---- Linear(100 -> 256 padded), f32 accumulation on the MXU ----
    x = x_ref[...].astype(w1_ref.dtype)          # in-kernel cast (cheap, VPU)
    h = jnp.dot(x, w1_ref[...],
                preferred_element_type=jnp.float32) + b1_ref[...]

    # ---- LeakyReLU(0.02) (padded lanes are exactly 0 and stay 0) ----
    h = jnp.where(h >= 0.0, h, LEAKY_SLOPE * h)

    # ---- LayerNorm(200): stats over the real 200 lanes only ----
    # Padded lanes hold 0, so the sum over 256 lanes equals the sum over 200.
    mu = jnp.sum(h, axis=-1, keepdims=True) * (1.0 / HID_DIM)
    diff = h - mu
    lane = jax.lax.broadcasted_iota(jnp.int32, h.shape, 1)
    diff_m = jnp.where(lane < HID_DIM, diff, 0.0)
    var = jnp.sum(diff_m * diff_m, axis=-1, keepdims=True) * (1.0 / HID_DIM)
    hn = diff * jax.lax.rsqrt(var + LN_EPS)
    # Padded lanes of hn are nonzero (-mu * rsqrt) but the matching W2' rows
    # are zero, so they contribute nothing to the next matmul.

    # ---- Linear(256 padded -> 784) + Sigmoid (exact) ----
    y = jnp.dot(hn.astype(w2_ref.dtype), w2_ref[...],
                preferred_element_type=jnp.float32) + b2_ref[...]
    o_ref[...] = (1.0 / (1.0 + jnp.exp(-y))).astype(o_ref.dtype)


def _prepare_params(params, mxu_dtype):
    """Fold the LayerNorm affine into the second Linear and zero-pad the
    hidden dimension 200 -> 256 (exact transformation)."""
    w1, b1, gamma, beta, w2, b2 = params
    # (hn * gamma + beta) @ W2 + b2  ==  hn @ (gamma^T * W2) + (beta @ W2 + b2)
    w2f = w2 * gamma.reshape(HID_DIM, 1)
    b2f = b2 + beta @ w2
    w1p = jnp.zeros((IN_DIM, HID_PAD), jnp.float32).at[:, :HID_DIM].set(w1)
    b1p = jnp.zeros((1, HID_PAD), jnp.float32).at[:, :HID_DIM].set(b1)
    w2p = jnp.zeros((HID_PAD, OUT_DIM), jnp.float32).at[:HID_DIM, :].set(w2f)
    return (w1p.astype(mxu_dtype), b1p,
            w2p.astype(mxu_dtype), b2f.astype(jnp.float32))


def generator_forward(x, params, *, block_b=512, mxu_dtype=jnp.bfloat16,
                      out_dtype=jnp.float32):
    """x: (B, 100) float32 -> (B, 784) out_dtype."""
    B = x.shape[0]
    w1p, b1p, w2p, b2p = _prepare_params(params, mxu_dtype)

    # Batch tiling: sublane-aligned tile, capped so the grid has at least two
    # steps whenever B allows it (v7x has 2 TCs; "parallel" shards the grid).
    tb = min(block_b, max(8, _round_up(pl.cdiv(B, 2), 8)))
    bp = _round_up(B, tb)
    num_blocks = bp // tb

    xin = x.astype(jnp.float32)
    if bp != B:                      # pad batch rows only when needed
        xin = jnp.pad(xin, ((0, bp - B), (0, 0)))

    w_item = jnp.dtype(mxu_dtype).itemsize
    o_item = jnp.dtype(out_dtype).itemsize
    cost = pl.CostEstimate(
        flops=2 * bp * (IN_DIM * HID_PAD + HID_PAD * OUT_DIM),
        transcendentals=bp * (OUT_DIM + 1),
        bytes_accessed=(bp * IN_DIM * 4
                        + IN_DIM * HID_PAD * w_item
                        + HID_PAD * 4
                        + HID_PAD * OUT_DIM * w_item
                        + OUT_DIM * 4
                        + bp * OUT_DIM * o_item),
    )

    out = pl.pallas_call(
        generator_kernel,
        out_shape=jax.ShapeDtypeStruct((bp, OUT_DIM), out_dtype),
        grid=(num_blocks,),
        in_specs=[
            pl.BlockSpec((tb, IN_DIM), lambda i: (i, 0)),        # x tile
            pl.BlockSpec((IN_DIM, HID_PAD), lambda i: (0, 0)),   # W1 (resident)
            pl.BlockSpec((1, HID_PAD), lambda i: (0, 0)),        # b1 (resident)
            pl.BlockSpec((HID_PAD, OUT_DIM), lambda i: (0, 0)),  # W2' (resident)
            pl.BlockSpec((1, OUT_DIM), lambda i: (0, 0)),        # b2' (resident)
        ],
        out_specs=pl.BlockSpec((tb, OUT_DIM), lambda i: (i, 0)),
        compiler_params=pltpu.CompilerParams(
            dimension_semantics=("parallel",)),
        cost_estimate=cost,
    )(xin, w1p, b1p, w2p, b2p)

    return out[:B] if bp != B else out


def init_params(key):
    """Deterministic synthetic parameters matching the module's shapes."""
    k1, k2, k3, k4, k5, k6 = jax.random.split(key, 6)
    lim1 = 1.0 / jnp.sqrt(jnp.float32(IN_DIM))
    lim2 = 1.0 / jnp.sqrt(jnp.float32(HID_DIM))
    w1 = jax.random.uniform(k1, (IN_DIM, HID_DIM), jnp.float32, -lim1, lim1)
    b1 = jax.random.uniform(k2, (1, HID_DIM), jnp.float32, -lim1, lim1)
    w2 = jax.random.uniform(k3, (HID_DIM, OUT_DIM), jnp.float32, -lim2, lim2)
    b2 = jax.random.uniform(k4, (1, OUT_DIM), jnp.float32, -lim2, lim2)
    # Non-trivial LayerNorm affine so the W2/b2 fold is actually exercised.
    gamma = 1.0 + 0.1 * jax.random.normal(k5, (1, HID_DIM), jnp.float32)
    beta = 0.1 * jax.random.normal(k6, (1, HID_DIM), jnp.float32)
    return (w1, b1, gamma, beta, w2, b2)


def reference_forward(x, params):
    w1, b1, gamma, beta, w2, b2 = params
    h = x @ w1 + b1
    h = jnp.where(h >= 0.0, h, LEAKY_SLOPE * h)
    mu = jnp.mean(h, axis=-1, keepdims=True)
    var = jnp.mean((h - mu) ** 2, axis=-1, keepdims=True)
    hn = (h - mu) * jax.lax.rsqrt(var + LN_EPS) * gamma + beta
    y = hn @ w2 + b2
    return jax.nn.sigmoid(y)


# TODO(synk): training utilities of the PyTorch module (BCELoss, Adam step,
# progress plotting) are out of scope for a forward-pass kernel.

if __name__ == "__main__":
    key = jax.random.PRNGKey(0)
    k_params, k_x, k_x2 = jax.random.split(key, 3)
    params = init_params(k_params)

    # Small smoke-test batch (single grid step).
    B = 8
    x = jax.random.normal(k_x, (B, IN_DIM), jnp.float32)
    ref = reference_forward(x, params)

    # Full-f32 MXU path: should track the reference tightly (exact sigmoid).
    out_f32 = jax.block_until_ready(
        generator_forward(x, params, mxu_dtype=jnp.float32))
    assert out_f32.shape == (B, OUT_DIM), out_f32.shape
    err = float(jnp.max(jnp.abs(out_f32 - ref)))
    assert err < 2e-3, err

    # Default path: bf16 MXU inputs, f32 accumulation, f32 output.
    out_bf16 = jax.block_until_ready(generator_forward(x, params))
    err = float(jnp.max(jnp.abs(out_bf16 - ref)))
    assert err < 3e-2, err

    # bf16 output (halves the dominant HBM writeback stream).
    out_bf16o = jax.block_until_ready(
        generator_forward(x, params, out_dtype=jnp.bfloat16))
    err = float(jnp.max(jnp.abs(out_bf16o.astype(jnp.float32) - ref)))
    assert err < 3e-2, err

    # Larger, non-multiple-of-tile batch: exercises the batch grid + padding.
    B2 = 200
    x2 = jax.random.normal(k_x2, (B2, IN_DIM), jnp.float32)
    ref2 = reference_forward(x2, params)
    out2 = jax.block_until_ready(
        generator_forward(x2, params, block_b=128, mxu_dtype=jnp.float32))
    assert out2.shape == (B2, OUT_DIM), out2.shape
    err = float(jnp.max(jnp.abs(out2 - ref2)))
    assert err < 2e-3, err

    print("KERNEL_OK")
</pallas_src>

<mosaic_0001>
module attributes {stable_mosaic.version = 11 : i64} {
  func.func @generator_kernel(%arg0: i32, %arg1: memref<8x100xf32, #tpu.memory_space<vmem>>, %arg2: memref<100x256xf32, #tpu.memory_space<vmem>>, %arg3: memref<1x256xf32, #tpu.memory_space<vmem>>, %arg4: memref<256x784xf32, #tpu.memory_space<vmem>>, %arg5: memref<1x784xf32, #tpu.memory_space<vmem>>, %arg6: memref<8x784xf32, #tpu.memory_space<vmem>>) attributes {dimension_semantics = [#tpu.dimension_semantics<parallel>], iteration_bounds = array<i64: 1>, scalar_prefetch = 0 : i64, scratch_operands = 0 : i64, tpu.core_type = #tpu.core_type<tc>, window_params = [{transform_indices = @transform_0, window_bounds = array<i64: 8, 100>}, {pipeline_mode = #tpu.pipeline_mode<synchronous>, transform_indices = @transform_1, window_bounds = array<i64: 100, 256>}, {pipeline_mode = #tpu.pipeline_mode<synchronous>, transform_indices = @transform_2, window_bounds = array<i64: 1, 256>}, {pipeline_mode = #tpu.pipeline_mode<synchronous>, transform_indices = @transform_3, window_bounds = array<i64: 256, 784>}, {pipeline_mode = #tpu.pipeline_mode<synchronous>, transform_indices = @transform_4, window_bounds = array<i64: 1, 784>}, {transform_indices = @transform_5, window_bounds = array<i64: 8, 784>}]} {
    %c0 = arith.constant 0 : index
    %c0_0 = arith.constant 0 : index
    %0 = vector.load %arg1[%c0, %c0_0] : memref<8x100xf32, #tpu.memory_space<vmem>>, vector<8x100xf32>
    %c0_1 = arith.constant 0 : index
    %c0_2 = arith.constant 0 : index
    %1 = vector.load %arg2[%c0_1, %c0_2] : memref<100x256xf32, #tpu.memory_space<vmem>>, vector<100x256xf32>
    %cst = arith.constant dense<0.000000e+00> : vector<8x256xf32>
    %2 = tpu.matmul %0, %1, %cst {dimension_numbers = #tpu.dot_dimension_numbers<[1], [0], [0], [1], [0, 0, 1, 1], [], []>} : vector<8x100xf32>, vector<100x256xf32>, vector<8x256xf32> -> vector<8x256xf32>
    %c0_3 = arith.constant 0 : index
    %c0_4 = arith.constant 0 : index
    %3 = vector.load %arg3[%c0_3, %c0_4] : memref<1x256xf32, #tpu.memory_space<vmem>>, vector<1x256xf32>
    %4 = vector.broadcast %3 : vector<1x256xf32> to vector<8x256xf32>
    %5 = arith.addf %2, %4 : vector<8x256xf32>
    %cst_5 = arith.constant 0.000000e+00 : f32
    %6 = vector.broadcast %cst_5 : f32 to vector<8x256xf32>
    %7 = arith.cmpf oge, %5, %6 : vector<8x256xf32>
    %cst_6 = arith.constant 2.000000e-02 : f32
    %8 = vector.broadcast %cst_6 : f32 to vector<8x256xf32>
    %9 = arith.mulf %8, %5 : vector<8x256xf32>
    %10 = arith.select %7, %5, %9 : vector<8x256xi1>, vector<8x256xf32>
    %cst_7 = arith.constant dense<0.000000e+00> : vector<8xf32>
    %11 = vector.multi_reduction <add>, %10, %cst_7 [1] : vector<8x256xf32> to vector<8xf32>
    %12 = vector.shape_cast %11 : vector<8xf32> to vector<8x1xf32>
    %cst_8 = arith.constant 5.000000e-03 : f32
    %13 = vector.broadcast %cst_8 : f32 to vector<8x1xf32>
    %14 = arith.mulf %12, %13 : vector<8x1xf32>
    %15 = vector.broadcast %14 : vector<8x1xf32> to vector<8x256xf32>
    %16 = arith.subf %10, %15 : vector<8x256xf32>
    %17 = tpu.iota {dimensions = array<i32: 1>} : vector<8x256xi32>
    %c200_i32 = arith.constant 200 : i32
    %18 = vector.broadcast %c200_i32 : i32 to vector<8x256xi32>
    %19 = arith.cmpi slt, %17, %18 : vector<8x256xi32>
    %cst_9 = arith.constant 0.000000e+00 : f32
    %20 = vector.broadcast %cst_9 : f32 to vector<8x256xf32>
    %21 = arith.select %19, %16, %20 : vector<8x256xi1>, vector<8x256xf32>
    %22 = arith.mulf %21, %21 : vector<8x256xf32>
    %cst_10 = arith.constant dense<0.000000e+00> : vector<8xf32>
    %23 = vector.multi_reduction <add>, %22, %cst_10 [1] : vector<8x256xf32> to vector<8xf32>
    %24 = vector.shape_cast %23 : vector<8xf32> to vector<8x1xf32>
    %cst_11 = arith.constant 5.000000e-03 : f32
    %25 = vector.broadcast %cst_11 : f32 to vector<8x1xf32>
    %26 = arith.mulf %24, %25 : vector<8x1xf32>
    %cst_12 = arith.constant 9.99999974E-6 : f32
    %27 = vector.broadcast %cst_12 : f32 to vector<8x1xf32>
    %28 = arith.addf %26, %27 : vector<8x1xf32>
    %29 = math.rsqrt %28 : vector<8x1xf32>
    %30 = vector.broadcast %29 : vector<8x1xf32> to vector<8x256xf32>
    %31 = arith.mulf %16, %30 : vector<8x256xf32>
    %c0_13 = arith.constant 0 : index
    %c0_14 = arith.constant 0 : index
    %32 = vector.load %arg4[%c0_13, %c0_14] : memref<256x784xf32, #tpu.memory_space<vmem>>, vector<256x784xf32>
    %cst_15 = arith.constant dense<0.000000e+00> : vector<8x784xf32>
    %33 = tpu.matmul %31, %32, %cst_15 {dimension_numbers = #tpu.dot_dimension_numbers<[1], [0], [0], [1], [0, 0, 1, 1], [], []>} : vector<8x256xf32>, vector<256x784xf32>, vector<8x784xf32> -> vector<8x784xf32>
    %c0_16 = arith.constant 0 : index
    %c0_17 = arith.constant 0 : index
    %34 = vector.load %arg5[%c0_16, %c0_17] : memref<1x784xf32, #tpu.memory_space<vmem>>, vector<1x784xf32>
    %35 = vector.broadcast %34 : vector<1x784xf32> to vector<8x784xf32>
    %36 = arith.addf %33, %35 : vector<8x784xf32>
    %cst_18 = arith.constant 0.000000e+00 : f32
    %37 = vector.broadcast %cst_18 : f32 to vector<8x784xf32>
    %38 = arith.subf %37, %36 : vector<8x784xf32>
    %39 = math.exp %38 : vector<8x784xf32>
    %cst_19 = arith.constant 1.000000e+00 : f32
    %40 = vector.broadcast %cst_19 : f32 to vector<8x784xf32>
    %41 = arith.addf %40, %39 : vector<8x784xf32>
    %cst_20 = arith.constant 1.000000e+00 : f32
    %42 = vector.broadcast %cst_20 : f32 to vector<8x784xf32>
    %43 = arith.divf %42, %41 : vector<8x784xf32>
    %c0_21 = arith.constant 0 : index
    %c0_22 = arith.constant 0 : index
    %44 = vector.load %arg6[%c0_21, %c0_22] : memref<8x784xf32, #tpu.memory_space<vmem>>, vector<8x784xf32>
    tpu.vector_store %arg6[%c0_21, %c0_22], %43 {strides = array<i32>} : memref<8x784xf32, #tpu.memory_space<vmem>>, vector<8x784xf32>,
    return
  }
  func.func @transform_0(%arg0: i32) -> (i32, i32) {
    %c0_i32 = arith.constant 0 : i32
    %c0_i32_0 = arith.constant 0 : i32
    return %arg0, %c0_i32 : i32, i32
  }
  func.func @transform_1(%arg0: i32) -> (i32, i32) {
    %c0_i32 = arith.constant 0 : i32
    %c0_i32_0 = arith.constant 0 : i32
    %c0_i32_1 = arith.constant 0 : i32
    return %c0_i32, %c0_i32_0 : i32, i32
  }
  func.func @transform_2(%arg0: i32) -> (i32, i32) {
    %c0_i32 = arith.constant 0 : i32
    %c0_i32_0 = arith.constant 0 : i32
    %c0_i32_1 = arith.constant 0 : i32
    return %c0_i32, %c0_i32_0 : i32, i32
  }
  func.func @transform_3(%arg0: i32) -> (i32, i32) {
    %c0_i32 = arith.constant 0 : i32
    %c0_i32_0 = arith.constant 0 : i32
    %c0_i32_1 = arith.constant 0 : i32
    return %c0_i32, %c0_i32_0 : i32, i32
  }
  func.func @transform_4(%arg0: i32) -> (i32, i32) {
    %c0_i32 = arith.constant 0 : i32
    %c0_i32_0 = arith.constant 0 : i32
    %c0_i32_1 = arith.constant 0 : i32
    return %c0_i32, %c0_i32_0 : i32, i32
  }
  func.func @transform_5(%arg0: i32) -> (i32, i32) {
    %c0_i32 = arith.constant 0 : i32
    %c0_i32_0 = arith.constant 0 : i32
    return %arg0, %c0_i32 : i32, i32
  }
}

</mosaic_0001>

<bundles_post_ra>
// kernel: tpu_custom_call.1
= control target key start
LH: loop header
LB: loop body
LE: loop exit
PB: predicated region body
PF: predicated region fallthrough
CT: control target
= control target key end

     0   :  { %v1121_v7 = vmov 0.0   ;;  %s1966_s0 = inlined_call_operand.vmem [shape: f32[8,100], index: 0, kind: input, shape index: {}]   ;;  %s1967_s1 = inlined_call_operand.vmem [shape: f32[100,256], index: 1, kind: input, shape index: {}]   ;;  %s1968_s2 = inlined_call_operand.vmem [shape: f32[1,256], index: 2, kind: input, shape index: {}]   ;;  %s1969_s3 = inlined_call_operand.vmem [shape: f32[256,784], index: 3, kind: input, shape index: {}]   ;;  %s1970_s4 = inlined_call_operand.vmem [shape: f32[1,784], index: 4, kind: input, shape index: {}]   ;;  %s1971_s5 = inlined_call_operand.hbm [shape: f32[8,784], index: 5, kind: output, shape index: {}]  }
   0x1   :  { %v23_v0 = vld [vmem:[%s1967_s1 + $0x8] sm:$0xff]  ;;  %v25_v1 = vld [vmem:[%s1967_s1 + $0x18] sm:$0xff]  ;;  %v22_v2 = vld [vmem:[%s1967_s1] sm:$0xff]  ;;  %135 = vmatprep.mubr.f32.mxu0 %v1121_v7 }
   0x2   :  { %v817_v3 = vpack.c.bf16 %v25_v1, %v23_v0  ;;  %v24_v4 = vld [vmem:[%s1967_s1 + $0x10] sm:$0xff]  ;;  %v27_v5 = vld [vmem:[%s1967_s1 + $0x28] sm:$0xff]  ;;  %v29_v6 = vld [vmem:[%s1967_s1 + $0x38] sm:$0xff] }
   0x3   :  { %v819_v8 = vpack.c.bf16 %v24_v4, %v22_v2  ;;  %v821_v9 = vpack.c.bf16 %v29_v6, %v27_v5  ;;  %v26_v10 = vld [vmem:[%s1967_s1 + $0x20] sm:$0xff]  ;;  %v28_v11 = vld [vmem:[%s1967_s1 + $0x30] sm:$0xff]  ;;  %v31_v12 = vld [vmem:[%s1967_s1 + $0x48] sm:$0xff] }
   0x4   :  { %818 = vmatprep.subr.bf16.mxu0 %v817_v3  ;;  %v33_v13 = vld [vmem:[%s1967_s1 + $0x58] sm:$0xff]  ;;  %v823_v14 = vpack.c.bf16 %v28_v11, %v26_v10  ;;  %v30_v16 = vld [vmem:[%s1967_s1 + $0x40] sm:$0xff]  ;;  %v32_v17 = vld [vmem:[%s1967_s1 + $0x50] sm:$0xff] }
   0x5   :  { %820 = vmatpush1.bf16.msra.mxu0 %v819_v8  ;;  %v825_v15 = vpack.c.bf16 %v33_v13, %v31_v12  ;;  %v35_v18 = vld [vmem:[%s1967_s1 + $0x68] sm:$0xff]  ;;  %v37_v19 = vld [vmem:[%s1967_s1 + $0x78] sm:$0xff]  ;;  %v827_v20 = vpack.c.bf16 %v32_v17, %v30_v16  ;;  %v34_v22 = vld [vmem:[%s1967_s1 + $0x60] sm:$0xff] }
   0x6   :  { %822 = vmatprep.subr.bf16.mxu0 %v821_v9  ;;  %v829_v21 = vpack.c.bf16 %v37_v19, %v35_v18  ;;  %v36_v23 = vld [vmem:[%s1967_s1 + $0x70] sm:$0xff] }
   0x9   :  { %824 = vmatpush1.bf16.msra.mxu0 %v823_v14 }
   0xa   :  { %826 = vmatprep.subr.bf16.mxu0 %v825_v15 }
   0xb   :  { %10 = vsyncpa [#allocation3], 0  ;;  %v39_v24 = vld [vmem:[%s1967_s1 + $0x88] sm:$0xff]  ;;  %v41_v25 = vld [vmem:[%s1967_s1 + $0x98] sm:$0xff]  ;;  %v831_v26 = vpack.c.bf16 %v36_v23, %v34_v22  ;;  %vm64_vm0 = vcmask 1043456   ;;  %vm60_vm1 = vcmask 818176   ;;  %v50_v40 = vlaneseq }
   0xc   :  { %v833_v27 = vpack.c.bf16 %v41_v25, %v39_v24  ;;  %v38_v28 = vld [vmem:[%s1967_s1 + $0x80] sm:$0xff]  ;;  %v40_v29 = vld [vmem:[%s1967_s1 + $0x90] sm:$0xff]  ;;  %v43_v30 = vld [vmem:[%s1967_s1 + $0xa8] sm:$0xff]  ;;  %vm763_vm5 = vcmask 130048  }
   0xd   :  { %828 = vmatpush1.bf16.msra.mxu0 %v827_v20  ;;  %v45_v31 = vld [vmem:[%s1967_s1 + $0xb8] sm:$0xff]  ;;  %v835_v32 = vpack.c.bf16 %v40_v29, %v38_v28  ;;  %v42_v34 = vld [vmem:[%s1967_s1 + $0xa0] sm:$0xff]  ;;  %v44_v35 = vld [vmem:[%s1967_s1 + $0xb0] sm:$0xff]  ;;  %v1235_v41 = vshrl.u32 %v50_v40, 7 }
   0xe   :  { %830 = vmatprep.subr.bf16.mxu0 %v829_v21  ;;  %v837_v33 = vpack.c.bf16 %v45_v31, %v43_v30  ;;  %v839_v36 = vpack.c.bf16 %v44_v35, %v42_v34  ;;  %v47_v37 = vld [vmem:[%s1967_s1 + $0xc8] sm:$0xf]  ;;  %v46_v38 = vld [vmem:[%s1967_s1 + $0xc0] sm:$0xf]  ;;  %v174_v58 = vld [vmem:[%s1969_s3 + $0x18] sm:$0xff] }
   0xf   :  { %v21_v39 = vld [vmem:[%s1966_s0] sm:$0xff]  ;;  %v52_v42 = vsub.s32 0, %v1235_v41  ;;  %v56_v44 = vsub.s32 1, %v1235_v41  ;;  %v172_v56 = vld [vmem:[%s1969_s3 + $0x8] sm:$0xff]  ;;  %v181_v60 = vld [vmem:[%s1969_s3 + $0x50] sm:$0xff] }
  0x10   :  { %v48_v43 = vld [vmem:[%s1968_s2] sm:$0x3]  ;;  %v178_v62 = vld [vmem:[%s1969_s3 + $0x38] sm:$0xff]  ;;  %v905_v63 = vpack.c.bf16 %v181_v60, %v174_v58  ;;  %v173_v1 = vld [vmem:[%s1969_s3 + $0x10] sm:$0xff] }
  0x11   :  { %832 = vmatpush1.bf16.msra.mxu0 %v831_v26  ;;  %v53_v45 = vrot.slane %v48_v43, %v52_v42  ;;  %v57_v46 = vrot.slane %v48_v43, %v56_v44  ;;  %v179_v57 = vld [vmem:[%s1969_s3 + $0x40] sm:$0xff]  ;;  %v180_v2 = vld [vmem:[%s1969_s3 + $0x48] sm:$0xff]  ;;  %v186_v3 = vld [vmem:[%s1969_s3 + $0x78] sm:$0xff] }
  0x12   :  { %834 = vmatprep.subr.bf16.mxu0 %v833_v27  ;;  %v841_v59 = vpack.c.bf16 %v179_v57, %v172_v56  ;;  %v171_v61 = vld [vmem:[%s1969_s3] sm:$0xff]  ;;  %v907_v4 = vpack.c.bf16 %v180_v2, %v173_v1  ;;  %v193_v5 = vld [vmem:[%s1969_s3 + $0xb0] sm:$0xff]  ;;  %v188_v6 = vld [vmem:[%s1969_s3 + $0x88] sm:$0xff] }
  0x13   :  { %v843_v0 = vpack.c.bf16 %v178_v62, %v171_v61  ;;  %v195_v7 = vld [vmem:[%s1969_s3 + $0xc0] sm:$0xff]  ;;  %v845_v8 = vpack.c.bf16 %v193_v5, %v186_v3  ;;  %v185_v10 = vld [vmem:[%s1969_s3 + $0x70] sm:$0xff]  ;;  %v192_v11 = vld [vmem:[%s1969_s3 + $0xa8] sm:$0xff] }
  0x14   :  { %842 = vmatprep.subr.bf16.mxu1 %v841_v59  ;;  %v909_v9 = vpack.c.bf16 %v195_v7, %v188_v6  ;;  %v187_v12 = vld [vmem:[%s1969_s3 + $0x80] sm:$0xff]  ;;  %v847_v13 = vpack.c.bf16 %v192_v11, %v185_v10  ;;  %v194_v14 = vld [vmem:[%s1969_s3 + $0xb8] sm:$0xff]  ;;  %v200_v15 = vld [vmem:[%s1969_s3 + $0xe8] sm:$0xff] }
  0x15   :  { %836 = vmatpush1.bf16.msra.mxu0 %v835_v32  ;;  %844 = vmatpush1.bf16.msra.mxu1 %v843_v0  ;;  %v207_v16 = vld [vmem:[%s1969_s3 + $0x120] sm:$0xff]  ;;  %v911_v17 = vpack.c.bf16 %v194_v14, %v187_v12  ;;  %v202_v19 = vld [vmem:[%s1969_s3 + $0xf8] sm:$0xff]  ;;  %v209_v20 = vld [vmem:[%s1969_s3 + $0x130] sm:$0xff] }
  0x16   :  { %838 = vmatprep.subr.bf16.mxu0 %v837_v33  ;;  %846 = vmatprep.subr.bf16.mxu1 %v845_v8  ;;  %v849_v18 = vpack.c.bf16 %v207_v16, %v200_v15  ;;  %v199_v21 = vld [vmem:[%s1969_s3 + $0xe0] sm:$0xff]  ;;  %v913_v22 = vpack.c.bf16 %v209_v20, %v202_v19  ;;  %v206_v23 = vld [vmem:[%s1969_s3 + $0x118] sm:$0xff]  ;;  %v201_v24 = vld [vmem:[%s1969_s3 + $0xf0] sm:$0xff] }
  0x17   :  { %v208_v25 = vld [vmem:[%s1969_s3 + $0x128] sm:$0xff]  ;;  %v851_v26 = vpack.c.bf16 %v206_v23, %v199_v21  ;;  %v214_v27 = vld [vmem:[%s1969_s3 + $0x158] sm:$0xff]  ;;  %v221_v28 = vld [vmem:[%s1969_s3 + $0x190] sm:$0xff] }
  0x18   :  { %v216_v29 = vld [vmem:[%s1969_s3 + $0x168] sm:$0xff]  ;;  %v915_v30 = vpack.c.bf16 %v208_v25, %v201_v24  ;;  %v853_v31 = vpack.c.bf16 %v221_v28, %v214_v27  ;;  %v223_v32 = vld [vmem:[%s1969_s3 + $0x1a0] sm:$0xff]  ;;  %v213_v33 = vld [vmem:[%s1969_s3 + $0x150] sm:$0xff] }
  0x19   :  { %840 = vmatpush1.bf16.msra.mxu0 %v839_v36  ;;  %848 = vmatpush1.bf16.msra.mxu1 %v847_v13  ;;  %v220_v34 = vld [vmem:[%s1969_s3 + $0x188] sm:$0xff]  ;;  %v917_v35 = vpack.c.bf16 %v223_v32, %v216_v29  ;;  %v215_v36 = vld [vmem:[%s1969_s3 + $0x160] sm:$0xff]  ;;  %v230_v43 = vld [vmem:[%s1969_s3 + $0x1d8] sm:$0xff] }
  0x1a   :  { %779 = vmatprep.subr.msk.mxu0 %vm64_vm0, %v47_v37  ;;  %850 = vmatprep.subr.bf16.mxu1 %v849_v18  ;;  %v222_v37 = vld [vmem:[%s1969_s3 + $0x198] sm:$0xff]  ;;  %v249_v57 = vld [vmem:[%s1969_s3 + $0x270] sm:$0xff]  ;;  %v244_v58 = vld [vmem:[%s1969_s3 + $0x248] sm:$0xff] }
  0x1b   :  { %v242_v56 = vld [vmem:[%s1969_s3 + $0x238] sm:$0xff]  ;;  %v251_v59 = vld [vmem:[%s1969_s3 + $0x280] sm:$0xff]  ;;  %v248_v0 = vld [vmem:[%s1969_s3 + $0x268] sm:$0xff] }
  0x1c   :  { %v861_v62 = vpack.c.bf16 %v249_v57, %v242_v56  ;;  %v243_v1 = vld [vmem:[%s1969_s3 + $0x240] sm:$0xff]  ;;  %v925_v2 = vpack.c.bf16 %v251_v59, %v244_v58  ;;  %v250_v3 = vld [vmem:[%s1969_s3 + $0x278] sm:$0xff]  ;;  %v265_v7 = vld [vmem:[%s1969_s3 + $0x2f0] sm:$0xff] }
  0x1d   :  { %780 = vmatpush1.msk.msra.mxu0 %vm64_vm0, %v46_v38  ;;  %v228_v38 = vld [vmem:[%s1969_s3 + $0x1c8] sm:$0xff]  ;;  %852 = vmatpush1.bf16.msra.mxu1 %v851_v26  ;;  %v263_v5 = vld [vmem:[%s1969_s3 + $0x2e0] sm:$0xff]  ;;  %v258_v6 = vld [vmem:[%s1969_s3 + $0x2b8] sm:$0xff] }
  0x1e   :  { %781 = vmatmul.mubr.msk.f32.vlgmr.msra.gmra.mrb[0].mxu0 %vm60_vm1, %v21_v39  ;;  %906 = vmatprep.subr.bf16.mxu0 %v905_v63  ;;  %v235_v39 = vld [vmem:[%s1969_s3 + $0x200] sm:$0xff]  ;;  %v241_v63 = vld [vmem:[%s1969_s3 + $0x230] sm:$0xff]  ;;  %v262_v12 = vld [vmem:[%s1969_s3 + $0x2d8] sm:$0xff]  ;;  %v929_v14 = vpack.c.bf16 %v265_v7, %v258_v6 }
  0x1f   :  { %908 = vmatpush1.bf16.msra.mxu0 %v907_v4  ;;  %854 = vmatprep.subr.bf16.mxu1 %v853_v31  ;;  %v256_v4 = vld [vmem:[%s1969_s3 + $0x2a8] sm:$0xff]  ;;  %v863_v8 = vpack.c.bf16 %v248_v0, %v241_v63  ;;  %v255_v11 = vld [vmem:[%s1969_s3 + $0x2a0] sm:$0xff]  ;;  %v257_v13 = vld [vmem:[%s1969_s3 + $0x2b0] sm:$0xff] }
  0x20   :  { %910 = vmatprep.subr.bf16.mxu0 %v909_v9  ;;  %v927_v9 = vpack.c.bf16 %v250_v3, %v243_v1  ;;  %v865_v10 = vpack.c.bf16 %v263_v5, %v256_v4  ;;  %v264_v15 = vld [vmem:[%s1969_s3 + $0x2e8] sm:$0xff]  ;;  %v270_v16 = vld [vmem:[%s1969_s3 + $0x318] sm:$0xff]  ;;  %v279_v19 = vld [vmem:[%s1969_s3 + $0x360] sm:$0xff]  ;;  %v867_v20 = vpack.c.bf16 %v262_v12, %v255_v11 }
  0x21   :  { %v272_v18 = vld [vmem:[%s1969_s3 + $0x328] sm:$0xff]  ;;  %v931_v21 = vpack.c.bf16 %v264_v15, %v257_v13  ;;  %v269_v23 = vld [vmem:[%s1969_s3 + $0x310] sm:$0xff]  ;;  %v271_v25 = vld [vmem:[%s1969_s3 + $0x320] sm:$0xff] }
  0x22   :  { %v276_v24 = vld [vmem:[%s1969_s3 + $0x348] sm:$0xff]  ;;  %v933_v26 = vpack.c.bf16 %v279_v19, %v272_v18  ;;  %v278_v27 = vld [vmem:[%s1969_s3 + $0x358] sm:$0xff]  ;;  %v291_v29 = vld [vmem:[%s1969_s3 + $0x3c0] sm:$0xff] }
  0x23   :  { %912 = vmatpush1.bf16.msra.mxu0 %v911_v17  ;;  %v277_v17 = vld [vmem:[%s1969_s3 + $0x350] sm:$0xff]  ;;  %v284_v28 = vld [vmem:[%s1969_s3 + $0x388] sm:$0xff]  ;;  %v871_v32 = vpack.c.bf16 %v276_v24, %v269_v23  ;;  %v306_v57 = vld [vmem:[%s1969_s3 + $0x438] sm:$0xff] }
  0x24   :  { %914 = vmatprep.subr.bf16.mxu0 %v913_v22  ;;  %v869_v22 = vpack.c.bf16 %v277_v17, %v270_v16  ;;  %v293_v31 = vld [vmem:[%s1969_s3 + $0x3d0] sm:$0xff]  ;;  %v312_v58 = vld [vmem:[%s1969_s3 + $0x468] sm:$0xff]  ;;  %v319_v59 = vld [vmem:[%s1969_s3 + $0x4a0] sm:$0xff] }
  0x25   :  { %v881_v0 = vpack.c.bf16 %v319_v59, %v312_v58  ;;  %v311_v1 = vld [vmem:[%s1969_s3 + $0x460] sm:$0xff]  ;;  %v313_v3 = vld [vmem:[%s1969_s3 + $0x470] sm:$0xff]  ;;  %v320_v5 = vld [vmem:[%s1969_s3 + $0x4a8] sm:$0xff] }
  0x26   :  { %v326_v6 = vld [vmem:[%s1969_s3 + $0x4d8] sm:$0xff]  ;;  %v333_v7 = vld [vmem:[%s1969_s3 + $0x510] sm:$0xff]  ;;  %v947_v11 = vpack.c.bf16 %v320_v5, %v313_v3  ;;  %v327_v16 = vld [vmem:[%s1969_s3 + $0x4e0] sm:$0xff] }
  0x27   :  { %916 = vmatpush1.bf16.msra.mxu0 %v915_v30  ;;  %v286_v30 = vld [vmem:[%s1969_s3 + $0x398] sm:$0xff]  ;;  %v885_v12 = vpack.c.bf16 %v333_v7, %v326_v6  ;;  %v325_v13 = vld [vmem:[%s1969_s3 + $0x4d0] sm:$0xff]  ;;  %v375_v58 = vld [vmem:[%s1969_s3 + $0x660] sm:$0xff] }
  0x28   :  { %918 = vmatprep.subr.bf16.mxu0 %v917_v35  ;;  %v283_v35 = vld [vmem:[%s1969_s3 + $0x380] sm:$0xff]  ;;  %v334_v17 = vld [vmem:[%s1969_s3 + $0x518] sm:$0xff]  ;;  %v376_v3 = vld [vmem:[%s1969_s3 + $0x668] sm:$0xff] }
  0x29   :  { %v951_v19 = vpack.c.bf16 %v334_v17, %v327_v16  ;;  %v370_v59 = vld [vmem:[%s1969_s3 + $0x638] sm:$0xff]  ;;  %v389_v5 = vld [vmem:[%s1969_s3 + $0x6d0] sm:$0xff]  ;;  %v176_v17 = vld [vmem:[%s1969_s3 + $0x28] sm:$0xff] }
  0xf1   :  { %v137_v47 = vpop.f32.mrb[0].mxu0 }
  0xf2   :  { %v138_v48 = vadd.f32 %v137_v47, %v53_v45  ;;  %v139_v49 = vpop.f32.mrb[1].mxu0  ;;  %v237_v45 = vld [vmem:[%s1969_s3 + $0x210] sm:$0xff]  ;;  %v919_v47 = vpack.c.bf16 %v222_v37, %v215_v36  ;;  %v290_v36 = vld [vmem:[%s1969_s3 + $0x3b8] sm:$0xff] }
  0xf3   :  { %v140_v50 = vadd.f32 %v139_v49, %v57_v46  ;;  %v855_v46 = vpack.c.bf16 %v220_v34, %v213_v33  ;;  %v227_v49 = vld [vmem:[%s1969_s3 + $0x1c0] sm:$0xff]  ;;  %v935_v33 = vpack.c.bf16 %v278_v27, %v271_v25  ;;  %v873_v34 = vpack.c.bf16 %v291_v29, %v284_v28  ;;  %v285_v37 = vld [vmem:[%s1969_s3 + $0x390] sm:$0xff] }
  0xf4   :  { %v144_v51 = vmul.f32 0.02, %v138_v48  ;;  %vm142_vm2 = vcmp.ge.f32.partialorder %v138_v48, 0.0  ;;  %920 = vmatpush1.bf16.msra.mxu0 %v919_v47  ;;  %v307_v47 = vld [vmem:[%s1969_s3 + $0x440] sm:$0xff] }
  0xf5   :  { %v145_v52 = vmul.f32 0.02, %v140_v50  ;;  %vm143_vm3 = vcmp.ge.f32.partialorder %v140_v50, 0.0  ;;  %856 = vmatpush1.bf16.msra.mxu1 %v855_v46  ;;  %v300_v46 = vld [vmem:[%s1969_s3 + $0x408] sm:$0xff] }
  0xf6   :  { %v1246_v53 = vsel %vm142_vm2, %v138_v48, %v144_v51  ;;  %v857_v48 = vpack.c.bf16 %v235_v39, %v228_v38  ;;  %v229_v51 = vld [vmem:[%s1969_s3 + $0x1d0] sm:$0xff]  ;;  %v937_v38 = vpack.c.bf16 %v293_v31, %v286_v30  ;;  %v292_v39 = vld [vmem:[%s1969_s3 + $0x3c8] sm:$0xff]  ;;  %v941_v56 = vpack.c.bf16 %v307_v47, %v300_v46  ;;  %v363_v47 = vld [vmem:[%s1969_s3 + $0x600] sm:$0xff] }
  0xf7   :  { %v1248_v54 = vsel %vm143_vm3, %v140_v50, %v145_v52  ;;  %v234_v50 = vld [vmem:[%s1969_s3 + $0x1f8] sm:$0xff]  ;;  %v921_v52 = vpack.c.bf16 %v237_v45, %v230_v43  ;;  %v305_v45 = vld [vmem:[%s1969_s3 + $0x430] sm:$0xff] }
  0xf8   :  { %v148_v55 = vadd.f32 %v1248_v54, %v1246_v53  ;;  %v859_v60 = vpack.c.bf16 %v234_v50, %v227_v49  ;;  %858 = vmatprep.subr.bf16.mxu1 %v857_v48  ;;  %v298_v43 = vld [vmem:[%s1969_s3 + $0x3f8] sm:$0xff]  ;;  %v875_v48 = vpack.c.bf16 %v290_v36, %v283_v35  ;;  %v939_v49 = vpack.c.bf16 %v292_v39, %v285_v37  ;;  %v349_v31 = vld [vmem:[%s1969_s3 + $0x590] sm:$0xff]  ;;  %v348_v37 = vld [vmem:[%s1969_s3 + $0x588] sm:$0xff] }
  0xf9   :  { %922 = vmatprep.subr.bf16.mxu0 %v921_v52  ;;  %v877_v50 = vpack.c.bf16 %v305_v45, %v298_v43  ;;  %v304_v52 = vld [vmem:[%s1969_s3 + $0x428] sm:$0xff]  ;;  %v341_v36 = vld [vmem:[%s1969_s3 + $0x550] sm:$0xff]  ;;  %v354_v39 = vld [vmem:[%s1969_s3 + $0x5b8] sm:$0xff] }
  0xfa   :  { %149 = vadd.xlane.f32.xlu0 %v148_v55  ;;  %v236_v55 = vld [vmem:[%s1969_s3 + $0x208] sm:$0xff]  ;;  %860 = vmatpush1.bf16.msra.mxu1 %v859_v60  ;;  %v314_v60 = vld [vmem:[%s1969_s3 + $0x478] sm:$0xff]  ;;  %v361_v43 = vld [vmem:[%s1969_s3 + $0x5f0] sm:$0xff] }
  0xfb   :  { %v923_v61 = vpack.c.bf16 %v236_v55, %v229_v51  ;;  %862 = vmatprep.subr.bf16.mxu1 %v861_v62  ;;  %v297_v51 = vld [vmem:[%s1969_s3 + $0x3f0] sm:$0xff]  ;;  %v299_v55 = vld [vmem:[%s1969_s3 + $0x400] sm:$0xff]  ;;  %v356_v45 = vld [vmem:[%s1969_s3 + $0x5c8] sm:$0xff]  ;;  %v893_v46 = vpack.c.bf16 %v361_v43, %v354_v39 }
  0xfc   :  { %v879_v62 = vpack.c.bf16 %v304_v52, %v297_v51  ;;  %v943_v63 = vpack.c.bf16 %v306_v57, %v299_v55  ;;  %v355_v52 = vld [vmem:[%s1969_s3 + $0x5c0] sm:$0xff]  ;;  %v362_v55 = vld [vmem:[%s1969_s3 + $0x5f8] sm:$0xff]  ;;  %v196_v39 = vld [vmem:[%s1969_s3 + $0xc8] sm:$0xff] }
  0xfd   :  { %924 = vmatpush1.bf16.msra.mxu0 %v923_v61  ;;  %v321_v61 = vld [vmem:[%s1969_s3 + $0x4b0] sm:$0xff]  ;;  %v959_v57 = vpack.c.bf16 %v362_v55, %v355_v52  ;;  %v191_v43 = vld [vmem:[%s1969_s3 + $0xa0] sm:$0xff]  ;;  %v210_v55 = vld [vmem:[%s1969_s3 + $0x138] sm:$0xff] }
  0xfe   :  { %926 = vmatprep.subr.bf16.mxu0 %v925_v2  ;;  %864 = vmatpush1.bf16.msra.mxu1 %v863_v8  ;;  %v318_v2 = vld [vmem:[%s1969_s3 + $0x498] sm:$0xff]  ;;  %v945_v4 = vpack.c.bf16 %v321_v61, %v314_v60  ;;  %v328_v8 = vld [vmem:[%s1969_s3 + $0x4e8] sm:$0xff]  ;;  %v377_v60 = vld [vmem:[%s1969_s3 + $0x670] sm:$0xff] }
  0xff   :  { %866 = vmatprep.subr.bf16.mxu1 %v865_v10  ;;  %v883_v10 = vpack.c.bf16 %v318_v2, %v311_v1  ;;  %v369_v1 = vld [vmem:[%s1969_s3 + $0x630] sm:$0xff]  ;;  %v203_v52 = vld [vmem:[%s1969_s3 + $0x100] sm:$0xff] }
 0x100   :  { %v963_v6 = vpack.c.bf16 %v376_v3, %v369_v1  ;;  %v224_v3 = vld [vmem:[%s1969_s3 + $0x1a8] sm:$0xff] }
 0x101   :  { %928 = vmatpush1.bf16.msra.mxu0 %v927_v9  ;;  %v335_v9 = vld [vmem:[%s1969_s3 + $0x520] sm:$0xff] }
 0x102   :  { %930 = vmatprep.subr.bf16.mxu0 %v929_v14  ;;  %868 = vmatpush1.bf16.msra.mxu1 %v867_v20  ;;  %v332_v14 = vld [vmem:[%s1969_s3 + $0x508] sm:$0xff]  ;;  %v949_v15 = vpack.c.bf16 %v335_v9, %v328_v8  ;;  %v155_v20 = vand.u32 127, %v50_v40  ;;  %v391_v9 = vld [vmem:[%s1969_s3 + $0x6e0] sm:$0xff] }
 0x103   :  { %870 = vmatprep.subr.bf16.mxu1 %v869_v22  ;;  %v887_v18 = vpack.c.bf16 %v332_v14, %v325_v13  ;;  %v340_v40 = vld [vmem:[%s1969_s3 + $0x548] sm:$0xff]  ;;  %v383_v13 = vld [vmem:[%s1969_s3 + $0x6a0] sm:$0xff]  ;;  %v390_v14 = vld [vmem:[%s1969_s3 + $0x6d8] sm:$0xff] }
 0x104   :  { %v384_v8 = vld [vmem:[%s1969_s3 + $0x6a8] sm:$0xff]  ;;  %v967_v16 = vpack.c.bf16 %v390_v14, %v383_v13  ;;  %v231_v14 = vld [vmem:[%s1969_s3 + $0x1e0] sm:$0xff] }
 0x105   :  { %932 = vmatpush1.bf16.msra.mxu0 %v931_v21  ;;  %v156_v21 = vadd.s32 128, %v155_v20 }
 0x106   :  { %934 = vmatprep.subr.bf16.mxu0 %v933_v26  ;;  %872 = vmatpush1.bf16.msra.mxu1 %v871_v32  ;;  %v339_v32 = vld [vmem:[%s1969_s3 + $0x540] sm:$0xff] }
 0x107   :  { %874 = vmatprep.subr.bf16.mxu1 %v873_v34  ;;  %vm158_vm4 = vcmp.lt.s32.totalorder %v156_v21, 200  ;;  %v296_v21 = vld [vmem:[%s1969_s3 + $0x3e8] sm:$0xff] }
 0x109   :  { %936 = vmatpush1.bf16.msra.mxu0 %v935_v33  ;;  %v346_v33 = vld [vmem:[%s1969_s3 + $0x578] sm:$0xff] }
 0x10a   :  { %938 = vmatprep.subr.bf16.mxu0 %v937_v38  ;;  %876 = vmatpush1.bf16.msra.mxu1 %v875_v48  ;;  %v891_v35 = vpack.c.bf16 %v346_v33, %v339_v32  ;;  %v955_v38 = vpack.c.bf16 %v348_v37, %v341_v36  ;;  %v353_v48 = vld [vmem:[%s1969_s3 + $0x5b0] sm:$0xff]  ;;  %v303_v32 = vld [vmem:[%s1969_s3 + $0x420] sm:$0xff]  ;;  %v310_v33 = vld [vmem:[%s1969_s3 + $0x458] sm:$0xff] }
 0x10b   :  { %878 = vmatprep.subr.bf16.mxu1 %v877_v50  ;;  %v957_v50 = vpack.c.bf16 %v363_v47, %v356_v45  ;;  %v211_v47 = vld [vmem:[%s1969_s3 + $0x140] sm:$0xff] }
 0x10d   :  { %940 = vmatpush1.bf16.msra.mxu0 %v939_v49  ;;  %v360_v49 = vld [vmem:[%s1969_s3 + $0x5e8] sm:$0xff] }
 0x10e   :  { %942 = vmatprep.subr.bf16.mxu0 %v941_v56  ;;  %880 = vmatpush1.bf16.msra.mxu1 %v879_v62  ;;  %v895_v51 = vpack.c.bf16 %v360_v49, %v353_v48  ;;  %v368_v56 = vld [vmem:[%s1969_s3 + $0x628] sm:$0xff]  ;;  %v961_v62 = vpack.c.bf16 %v377_v60, %v370_v59  ;;  %v317_v48 = vld [vmem:[%s1969_s3 + $0x490] sm:$0xff]  ;;  %v218_v60 = vld [vmem:[%s1969_s3 + $0x178] sm:$0xff] }
 0x10f   :  { %882 = vmatprep.subr.bf16.mxu1 %v881_v0  ;;  %v897_v61 = vpack.c.bf16 %v375_v58, %v368_v56  ;;  %v374_v0 = vld [vmem:[%s1969_s3 + $0x658] sm:$0xff]  ;;  %v324_v49 = vld [vmem:[%s1969_s3 + $0x4c8] sm:$0xff]  ;;  %v205_v58 = vld [vmem:[%s1969_s3 + $0x110] sm:$0xff] }
 0x110   :  { %v212_v59 = vld [vmem:[%s1969_s3 + $0x148] sm:$0xff] }
 0x111   :  { %944 = vmatpush1.bf16.msra.mxu0 %v943_v63  ;;  %v367_v63 = vld [vmem:[%s1969_s3 + $0x620] sm:$0xff]  ;;  %v1043_v1 = vpack.c.bf16 %v212_v59, %v205_v58  ;;  %v282_v59 = vld [vmem:[%s1969_s3 + $0x378] sm:$0xff] }
 0x112   :  { %946 = vmatprep.subr.bf16.mxu0 %v945_v4  ;;  %884 = vmatpush1.bf16.msra.mxu1 %v883_v10  ;;  %v899_v2 = vpack.c.bf16 %v374_v0, %v367_v63  ;;  %v382_v4 = vld [vmem:[%s1969_s3 + $0x698] sm:$0xff]  ;;  %v381_v10 = vld [vmem:[%s1969_s3 + $0x690] sm:$0xff]  ;;  %v979_v0 = vpack.c.bf16 %v210_v55, %v203_v52  ;;  %v275_v58 = vld [vmem:[%s1969_s3 + $0x340] sm:$0xff] }
 0x113   :  { %886 = vmatprep.subr.bf16.mxu1 %v885_v12  ;;  %v901_v7 = vpack.c.bf16 %v389_v5, %v382_v4  ;;  %v388_v12 = vld [vmem:[%s1969_s3 + $0x6c8] sm:$0xff]  ;;  %v338_v63 = vld [vmem:[%s1969_s3 + $0x538] sm:$0xff]  ;;  %v273_v52 = vld [vmem:[%s1969_s3 + $0x330] sm:$0xff] }
 0x115   :  { %948 = vmatpush1.bf16.msra.mxu0 %v947_v11  ;;  %v965_v11 = vpack.c.bf16 %v391_v9, %v384_v8  ;;  %v232_v8 = vld [vmem:[%s1969_s3 + $0x1e8] sm:$0xff]  ;;  %v239_v9 = vld [vmem:[%s1969_s3 + $0x220] sm:$0xff] }
 0x116   :  { %950 = vmatprep.subr.bf16.mxu0 %v949_v15  ;;  %888 = vmatpush1.bf16.msra.mxu1 %v887_v18  ;;  %v903_v15 = vpack.c.bf16 %v388_v12, %v381_v10  ;;  %v183_v18 = vld [vmem:[%s1969_s3 + $0x60] sm:$0xff]  ;;  %v345_v10 = vld [vmem:[%s1969_s3 + $0x570] sm:$0xff] }
 0x117   :  { %v969_v20 = vpack.c.bf16 %v183_v18, %v176_v17  ;;  %v233_v18 = vld [vmem:[%s1969_s3 + $0x1f0] sm:$0xff] }
 0x119   :  { %952 = vmatpush1.bf16.msra.mxu0 %v951_v19  ;;  %v289_v19 = vld [vmem:[%s1969_s3 + $0x3b0] sm:$0xff] }
 0x187   :  { %v150_v22 = vpop.xlane.xlu0 %149 }
 0x188   :  { %v151_v23 = vmul.f32 0.005, %v150_v22  ;;  %v1033_v22 = vpack.c.bf16 %v296_v21, %v289_v19  ;;  %v240_v19 = vld [vmem:[%s1969_s3 + $0x228] sm:$0xff]  ;;  %v253_v21 = vld [vmem:[%s1969_s3 + $0x290] sm:$0xff] }
 0x18a   :  { %v1542_v24 = vsub.f32 %v1246_v53, %v151_v23  ;;  %v1545_v25 = vsub.f32 %v1248_v54, %v151_v23  ;;  %v347_v53 = vld [vmem:[%s1969_s3 + $0x580] sm:$0xff]  ;;  %v342_v54 = vld [vmem:[%s1969_s3 + $0x558] sm:$0xff] }
 0x18b   :  { %v889_v30 = vpack.c.bf16 %v347_v53, %v340_v40  ;;  %v953_v34 = vpack.c.bf16 %v349_v31, %v342_v54  ;;  %v177_v40 = vld [vmem:[%s1969_s3 + $0x30] sm:$0xff]  ;;  %v184_v53 = vld [vmem:[%s1969_s3 + $0x68] sm:$0xff]  ;;  %v190_v54 = vld [vmem:[%s1969_s3 + $0x98] sm:$0xff] }
 0x18c   :  { %v160_v26 = vsel %vm158_vm4, %v1545_v25, 0.0  ;;  %v161_v27 = vmul.f32 %v1542_v24, %v1542_v24  ;;  %v197_v31 = vld [vmem:[%s1969_s3 + $0xd0] sm:$0xff]  ;;  %v1035_v37 = vpack.c.bf16 %v184_v53, %v177_v40 }
 0x18d   :  { %v162_v28 = vmul.f32 %v160_v26, %v160_v26  ;;  %890 = vmatprep.subr.bf16.mxu1 %v889_v30  ;;  %954 = vmatprep.subr.bf16.mxu0 %v953_v34  ;;  %v973_v45 = vpack.c.bf16 %v197_v31, %v190_v54  ;;  %v247_v54 = vld [vmem:[%s1969_s3 + $0x260] sm:$0xff]  ;;  %v260_v31 = vld [vmem:[%s1969_s3 + $0x2c8] sm:$0xff] }
 0x18e   :  { %892 = vmatpush1.bf16.msra.mxu1 %v891_v35  ;;  %956 = vmatpush1.bf16.msra.mxu0 %v955_v38  ;;  %v189_v38 = vld [vmem:[%s1969_s3 + $0x90] sm:$0xff] }
 0x18f   :  { %v163_v29 = vadd.f32 %v162_v28, %v161_v27  ;;  %894 = vmatprep.subr.bf16.mxu1 %v893_v46  ;;  %958 = vmatprep.subr.bf16.mxu0 %v957_v50  ;;  %v175_v28 = vld [vmem:[%s1969_s3 + $0x20] sm:$0xff]  ;;  %v1037_v46 = vpack.c.bf16 %v310_v33, %v303_v32  ;;  %v975_v50 = vpack.c.bf16 %v196_v39, %v189_v38  ;;  %v373_v33 = vld [vmem:[%s1969_s3 + $0x650] sm:$0xff]  ;;  %v266_v39 = vld [vmem:[%s1969_s3 + $0x2f8] sm:$0xff] }
 0x190   :  { %v267_v32 = vld [vmem:[%s1969_s3 + $0x300] sm:$0xff] }
 0x191   :  { %164 = vadd.xlane.f32.xlu0 %v163_v29  ;;  %v182_v29 = vld [vmem:[%s1969_s3 + $0x58] sm:$0xff]  ;;  %v259_v38 = vld [vmem:[%s1969_s3 + $0x2c0] sm:$0xff] }
 0x192   :  { %896 = vmatpush1.bf16.msra.mxu1 %v895_v51  ;;  %960 = vmatpush1.bf16.msra.mxu0 %v959_v57  ;;  %v971_v36 = vpack.c.bf16 %v182_v29, %v175_v28  ;;  %v1041_v57 = vpack.c.bf16 %v324_v49, %v317_v48  ;;  %v245_v28 = vld [vmem:[%s1969_s3 + $0x250] sm:$0xff]  ;;  %v252_v29 = vld [vmem:[%s1969_s3 + $0x288] sm:$0xff]  ;;  %v387_v48 = vld [vmem:[%s1969_s3 + $0x6c0] sm:$0xff] }
 0x193   :  { %898 = vmatprep.subr.bf16.mxu1 %v897_v61  ;;  %962 = vmatprep.subr.bf16.mxu0 %v961_v62  ;;  %v225_v61 = vld [vmem:[%s1969_s3 + $0x1b0] sm:$0xff]  ;;  %v331_v62 = vld [vmem:[%s1969_s3 + $0x500] sm:$0xff]  ;;  %v394_v49 = vld [vmem:[%s1969_s3 + $0x6f8] sm:$0xff] }
 0x194   :  { %v981_v4 = vpack.c.bf16 %v225_v61, %v218_v60  ;;  %v1045_v5 = vpack.c.bf16 %v338_v63, %v331_v62  ;;  %v288_v60 = vld [vmem:[%s1969_s3 + $0x3a8] sm:$0xff]  ;;  %v295_v61 = vld [vmem:[%s1969_s3 + $0x3e0] sm:$0xff]  ;;  %v1063_v63 = vpack.c.bf16 %v282_v59, %v275_v58 }
 0x196   :  { %900 = vmatpush1.bf16.msra.mxu1 %v899_v2  ;;  %964 = vmatpush1.bf16.msra.mxu0 %v963_v6  ;;  %v217_v2 = vld [vmem:[%s1969_s3 + $0x170] sm:$0xff]  ;;  %v219_v6 = vld [vmem:[%s1969_s3 + $0x180] sm:$0xff] }
 0x197   :  { %902 = vmatprep.subr.bf16.mxu1 %v901_v7  ;;  %966 = vmatprep.subr.bf16.mxu0 %v965_v11  ;;  %v226_v7 = vld [vmem:[%s1969_s3 + $0x1b8] sm:$0xff]  ;;  %v352_v11 = vld [vmem:[%s1969_s3 + $0x5a8] sm:$0xff]  ;;  %v983_v12 = vpack.c.bf16 %v224_v3, %v217_v2 }
 0x198   :  { %v1047_v13 = vpack.c.bf16 %v226_v7, %v219_v6  ;;  %v1049_v17 = vpack.c.bf16 %v352_v11, %v345_v10  ;;  %v294_v2 = vld [vmem:[%s1969_s3 + $0x3d8] sm:$0xff]  ;;  %v301_v7 = vld [vmem:[%s1969_s3 + $0x410] sm:$0xff]  ;;  %v323_v10 = vld [vmem:[%s1969_s3 + $0x4c0] sm:$0xff] }
 0x199   :  { %v302_v3 = vld [vmem:[%s1969_s3 + $0x418] sm:$0xff] }
 0x19a   :  { %904 = vmatpush1.bf16.msra.mxu1 %v903_v15  ;;  %968 = vmatpush1.bf16.msra.mxu0 %v967_v16  ;;  %v238_v15 = vld [vmem:[%s1969_s3 + $0x218] sm:$0xff]  ;;  %v985_v16 = vpack.c.bf16 %v239_v9, %v232_v8  ;;  %v308_v8 = vld [vmem:[%s1969_s3 + $0x448] sm:$0xff] }
 0x19b   :  { %970 = vmatprep.subr.bf16.mxu1 %v969_v20  ;;  %1034 = vmatprep.subr.bf16.mxu0 %v1033_v22  ;;  %v246_v20 = vld [vmem:[%s1969_s3 + $0x258] sm:$0xff]  ;;  %v359_v22 = vld [vmem:[%s1969_s3 + $0x5e0] sm:$0xff]  ;;  %v316_v9 = vld [vmem:[%s1969_s3 + $0x488] sm:$0xff]  ;;  %v1007_v11 = vpack.c.bf16 %v308_v8, %v301_v7 }
 0x19c   :  { %v989_v40 = vpack.c.bf16 %v253_v21, %v246_v20  ;;  %v336_v20 = vld [vmem:[%s1969_s3 + $0x528] sm:$0xff] }
 0x19d   :  { %v344_v21 = vld [vmem:[%s1969_s3 + $0x568] sm:$0xff] }
 0x21e   :  { %v165_v23 = vpop.xlane.xlu0 %164 }
 0x21f   :  { %v166_v26 = vmul.f32 0.005, %v165_v23  ;;  %v366_v23 = vld [vmem:[%s1969_s3 + $0x618] sm:$0xff] }
 0x220   :  { %v1053_v53 = vpack.c.bf16 %v366_v23, %v359_v22  ;;  %v351_v22 = vld [vmem:[%s1969_s3 + $0x5a0] sm:$0xff] }
 0x221   :  { %v167_v27 = vadd.f32 1e-05, %v166_v26  ;;  %v987_v26 = vpack.c.bf16 %v238_v15, %v231_v14  ;;  %v322_v14 = vld [vmem:[%s1969_s3 + $0x4b8] sm:$0xff] }
 0x222   :  { %v330_v15 = vld [vmem:[%s1969_s3 + $0x4f8] sm:$0xff] }
 0x223   :  { %1067 = vrsqrt.f32 %v167_v27  ;;  %v1051_v27 = vpack.c.bf16 %v240_v19, %v233_v18  ;;  %v329_v19 = vld [vmem:[%s1969_s3 + $0x4f0] sm:$0xff] }
 0x224   :  { %v1015_v23 = vpack.c.bf16 %v336_v20, %v329_v19 }
 0x22d   :  { %v1068_v30 = vpop.eup %1067 }
 0x22e   :  { %v170_v34 = vmul.f32 %v1068_v30, %v1545_v25  ;;  %v1684_v35 = vmul.f32 %v1068_v30, %v1542_v24  ;;  %v198_v25 = vld [vmem:[%s1969_s3 + $0xd8] sm:$0xff]  ;;  %v204_v24 = vld [vmem:[%s1969_s3 + $0x108] sm:$0xff] }
 0x22f   :  { %v1039_v51 = vpack.c.bf16 %v198_v25, %v191_v43  ;;  %v977_v56 = vpack.c.bf16 %v211_v47, %v204_v24  ;;  %v254_v30 = vld [vmem:[%s1969_s3 + $0x298] sm:$0xff]  ;;  %v993_v43 = vpack.c.bf16 %v267_v32, %v260_v31  ;;  %v261_v24 = vld [vmem:[%s1969_s3 + $0x2d0] sm:$0xff]  ;;  %v364_v31 = vld [vmem:[%s1969_s3 + $0x608] sm:$0xff] }
 0x230   :  { %496 = vmatprep.mubr.f32.mxu1 %v170_v34  ;;  %567 = vmatprep.mubr.f32.mxu0 %v170_v34  ;;  %v281_v47 = vld [vmem:[%s1969_s3 + $0x370] sm:$0xff]  ;;  %v372_v32 = vld [vmem:[%s1969_s3 + $0x648] sm:$0xff] }
 0x231   :  { %497 = vmatmul.mubr.f32.vlgmr.msra.gmra.mrb[0].mxu1 %v1684_v35  ;;  %568 = vmatmul.mubr.f32.vlgmr.msra.gmra.mrb[2].mxu0 %v1684_v35 }
 0x232   :  { %972 = vmatpush1.bf16.msra.mxu1 %v971_v36  ;;  %1036 = vmatpush3.bf16.msra.mxu0 %v1035_v37  ;;  %v991_v36 = vpack.c.bf16 %v252_v29, %v245_v28  ;;  %v1055_v37 = vpack.c.bf16 %v254_v30, %v247_v54  ;;  %v350_v28 = vld [vmem:[%s1969_s3 + $0x598] sm:$0xff]  ;;  %v357_v30 = vld [vmem:[%s1969_s3 + $0x5d0] sm:$0xff] }
 0x233   :  { %638 = vmatprep.mubr.f32.mxu1 %v170_v34  ;;  %709 = vmatprep.mubr.f32.mxu0 %v170_v34  ;;  %v380_v34 = vld [vmem:[%s1969_s3 + $0x688] sm:$0xff]  ;;  %v358_v29 = vld [vmem:[%s1969_s3 + $0x5d8] sm:$0xff] }
 0x234   :  { %974 = vmatprep.subr.bf16.mxu1 %v973_v45  ;;  %1038 = vmatprep.subr.bf16.mxu0 %v1037_v46  ;;  %v1057_v25 = vpack.c.bf16 %v380_v34, %v373_v33  ;;  %v268_v45 = vld [vmem:[%s1969_s3 + $0x308] sm:$0xff]  ;;  %v274_v46 = vld [vmem:[%s1969_s3 + $0x338] sm:$0xff]  ;;  %v379_v33 = vld [vmem:[%s1969_s3 + $0x680] sm:$0xff]  ;;  %v1023_v34 = vpack.c.bf16 %v364_v31, %v357_v30 }
 0x235   :  { %v997_v55 = vpack.c.bf16 %v281_v47, %v274_v46  ;;  %v392_v46 = vld [vmem:[%s1969_s3 + $0x6e8] sm:$0xff] }
 0x236   :  { %976 = vmatpush1.bf16.msra.mxu1 %v975_v50  ;;  %1040 = vmatpush3.bf16.msra.mxu0 %v1039_v51  ;;  %v995_v50 = vpack.c.bf16 %v266_v39, %v259_v38  ;;  %v1059_v51 = vpack.c.bf16 %v268_v45, %v261_v24  ;;  %v378_v38 = vld [vmem:[%s1969_s3 + $0x678] sm:$0xff]  ;;  %v385_v45 = vld [vmem:[%s1969_s3 + $0x6b0] sm:$0xff] }
 0x237   :  { %978 = vmatprep.subr.bf16.mxu1 %v977_v56  ;;  %1042 = vmatprep.subr.bf16.mxu0 %v1041_v57  ;;  %v1061_v56 = vpack.c.bf16 %v394_v49, %v387_v48  ;;  %v280_v57 = vld [vmem:[%s1969_s3 + $0x368] sm:$0xff]  ;;  %v386_v39 = vld [vmem:[%s1969_s3 + $0x6b8] sm:$0xff]  ;;  %v1031_v47 = vpack.c.bf16 %v392_v46, %v385_v45  ;;  %v407_v48 = vsub.s32 2, %v1235_v41  ;;  %v395_v49 = vld [vmem:[%s1970_s4] sm:$0x7f] }
 0x238   :  { %v999_v62 = vpack.c.bf16 %v280_v57, %v273_v52 }
 0x239   :  { %v408_v52 = vrot.slane %v395_v49, %v407_v48 }
 0x23a   :  { %980 = vmatpush1.bf16.msra.mxu1 %v979_v0  ;;  %1044 = vmatpush3.bf16.msra.mxu0 %v1043_v1  ;;  %v1001_v0 = vpack.c.bf16 %v295_v61, %v288_v60  ;;  %v287_v1 = vld [vmem:[%s1969_s3 + $0x3a0] sm:$0xff] }
 0x23b   :  { %982 = vmatprep.subr.bf16.mxu1 %v981_v4  ;;  %1046 = vmatprep.subr.bf16.mxu0 %v1045_v5  ;;  %v309_v4 = vld [vmem:[%s1969_s3 + $0x450] sm:$0xff]  ;;  %v1003_v5 = vpack.c.bf16 %v294_v2, %v287_v1 }
 0x23c   :  { %v1005_v6 = vpack.c.bf16 %v309_v4, %v302_v3 }
 0x23e   :  { %984 = vmatpush1.bf16.msra.mxu1 %v983_v12  ;;  %1048 = vmatpush3.bf16.msra.mxu0 %v1047_v13  ;;  %v1009_v12 = vpack.c.bf16 %v323_v10, %v316_v9  ;;  %v315_v13 = vld [vmem:[%s1969_s3 + $0x480] sm:$0xff] }
 0x23f   :  { %986 = vmatprep.subr.bf16.mxu1 %v985_v16  ;;  %1050 = vmatprep.subr.bf16.mxu0 %v1049_v17  ;;  %v337_v16 = vld [vmem:[%s1969_s3 + $0x530] sm:$0xff]  ;;  %v1011_v17 = vpack.c.bf16 %v322_v14, %v315_v13  ;;  %v423_v14 = vsub.s32 6, %v1235_v41 }
 0x240   :  { %v1013_v18 = vpack.c.bf16 %v337_v16, %v330_v15 }
 0x241   :  { %v424_v19 = vrot.slane %v395_v49, %v423_v14 }
 0x242   :  { %988 = vmatpush1.bf16.msra.mxu1 %v987_v26  ;;  %1052 = vmatpush3.bf16.msra.mxu0 %v1051_v27  ;;  %v1017_v26 = vpack.c.bf16 %v351_v22, %v344_v21  ;;  %v343_v27 = vld [vmem:[%s1969_s3 + $0x560] sm:$0xff] }
 0x243   :  { %990 = vmatprep.subr.bf16.mxu1 %v989_v40  ;;  %1054 = vmatprep.subr.bf16.mxu0 %v1053_v53  ;;  %v365_v40 = vld [vmem:[%s1969_s3 + $0x610] sm:$0xff]  ;;  %v1019_v53 = vpack.c.bf16 %v350_v28, %v343_v27 }
 0x244   :  { %v1021_v54 = vpack.c.bf16 %v365_v40, %v358_v29  ;;  %v415_v40 = vsub.s32 4, %v1235_v41 }
 0x246   :  { %992 = vmatpush1.bf16.msra.mxu1 %v991_v36  ;;  %1056 = vmatpush3.bf16.msra.mxu0 %v1055_v37  ;;  %v1025_v36 = vpack.c.bf16 %v379_v33, %v372_v32  ;;  %v371_v37 = vld [vmem:[%s1969_s3 + $0x640] sm:$0xff] }
 0x247   :  { %994 = vmatprep.subr.bf16.mxu1 %v993_v43  ;;  %1058 = vmatprep.subr.bf16.mxu0 %v1057_v25  ;;  %v393_v43 = vld [vmem:[%s1969_s3 + $0x6f0] sm:$0xff]  ;;  %v1027_v25 = vpack.c.bf16 %v378_v38, %v371_v37  ;;  %s1122_s3 = smov [#allocation2]  }
 0x248   :  { %v1029_v24 = vpack.c.bf16 %v393_v43, %v386_v39  ;;  %s771_s4 = sshll.u32 %s1122_s3, 4  ;;  %s772_s4 = int_to_ptr.vmem [resolvable:$true] %s771_s4 }
 0x249   :  { %s1097_s2 = scalar_lea.vmem %s772_s4, 896  ;;  %p1102_p1 = scmp.lt.s32.totalorder %s772_s4, %s772_s4 }
 0x24a   :  { %996 = vmatpush1.bf16.msra.mxu1 %v995_v50  ;;  %1060 = vmatpush3.bf16.msra.mxu0 %v1059_v51  ;;  %v411_v50 = vsub.s32 3, %v1235_v41  ;;  %v400_v51 = vrot.slane %v395_v49, %v52_v42  ;;  %p1098_p0 = scmp.ne.s32.totalorder %s772_s4, %s1097_s2  ;;  %p1103_p2 = scmp.lt.s32.totalorder %s1097_s2, %s1097_s2 }
 0x24b   :  { %998 = vmatprep.subr.bf16.mxu1 %v997_v55  ;;  %1062 = vmatprep.subr.bf16.mxu0 %v1061_v56  ;;  %v404_v55 = vrot.slane %v395_v49, %v56_v44 }
 0x24c   :  { %v412_v56 = vrot.slane %v395_v49, %v411_v50  ;;  %p1104_p3 = por %p1103_p2, %p1102_p1 }
 0x24e   :  { %1000 = vmatpush1.bf16.msra.mxu1 %v999_v62  ;;  %1064 = vmatpush3.bf16.msra.mxu0 %v1063_v63  ;;  %p1105_p4 = pnand %p1104_p3, %p1098_p0 }
 0x24f   :  { %1002 = vmatprep.subr.bf16.mxu1 %v1001_v0 }
 0x251   :  { %710 = vmatmul.mubr.f32.vlgmr.msra.gmra.mrb[4].mxu0 %v1684_v35 }
 0x252   :  { %1004 = vmatpush1.bf16.msra.mxu1 %v1003_v5 }
 0x253   :  { %1006 = vmatprep.subr.bf16.mxu1 %v1005_v6 }
 0x256   :  { %1008 = vmatpush1.bf16.msra.mxu1 %v1007_v11 }
 0x257   :  { %1010 = vmatprep.subr.bf16.mxu1 %v1009_v12 }
 0x25a   :  { %1012 = vmatpush1.bf16.msra.mxu1 %v1011_v17 }
 0x25b   :  { %1014 = vmatprep.subr.bf16.mxu1 %v1013_v18 }
 0x25e   :  { %1016 = vmatpush1.bf16.msra.mxu1 %v1015_v23 }
 0x25f   :  { %1018 = vmatprep.subr.bf16.mxu1 %v1017_v26 }
 0x262   :  { %1020 = vmatpush1.bf16.msra.mxu1 %v1019_v53  ;;  %v419_v53 = vsub.s32 5, %v1235_v41 }
 0x263   :  { %1022 = vmatprep.subr.bf16.mxu1 %v1021_v54  ;;  %v416_v54 = vrot.slane %v395_v49, %v415_v40 }
 0x264   :  { %v420_v30 = vrot.slane %v395_v49, %v419_v53 }
 0x266   :  { %1024 = vmatpush1.bf16.msra.mxu1 %v1023_v34 }
 0x267   :  { %1026 = vmatprep.subr.bf16.mxu1 %v1025_v36 }
 0x26a   :  { %1028 = vmatpush1.bf16.msra.mxu1 %v1027_v25 }
 0x26b   :  { %1030 = vmatprep.subr.bf16.mxu1 %v1029_v24 }
 0x26e   :  { %1032 = vmatpush1.bf16.msra.mxu1 %v1031_v47 }
 0x271   :  { %639 = vmatmul.mubr.f32.vlgmr.msra.gmra.mrb[2].mxu1 %v1684_v35 }
 0x304   :  { %v498_v57 = vpop.f32.mrb[0].mxu1  ;;  %v569_v58 = vpop.f32.mrb[2].mxu0 }
 0x305   :  { %v499_v59 = vadd.f32 %v498_v57, %v400_v51  ;;  %v570_v35 = vadd.f32 %v569_v58, %v408_v52  ;;  %v500_v60 = vpop.f32.mrb[1].mxu1  ;;  %v571_v61 = vpop.f32.mrb[3].mxu0 }
 0x306   :  { %v501_v62 = vadd.f32 %v500_v60, %v404_v55  ;;  %v572_v63 = vadd.f32 %v571_v61, %v412_v56 }
 0x307   :  { %v715_v0 = vsub.f32 0.0, %v499_v59  ;;  %v717_v1 = vsub.f32 0.0, %v570_v35 }
 0x308   :  { %v716_v2 = vsub.f32 0.0, %v501_v62  ;;  %v718_v3 = vsub.f32 0.0, %v572_v63 }
 0x309   :  { %v722_v4 = vmul.f32 1.442695, %v715_v0  ;;  %v726_v5 = vmul.f32 1.442695, %v717_v1 }
 0x30a   :  { %v724_v42 = vmul.f32 1.442695, %v716_v2  ;;  %v728_v6 = vmul.f32 1.442695, %v718_v3 }
 0x30b   :  { %1069 = vpow2.f32 %v722_v4 }
 0x30c   :  { %1071 = vpow2.f32 %v726_v5 }
 0x30d   :  { %1073 = vpow2.f32 %v724_v42 }
 0x30e   :  { %1075 = vpow2.f32 %v728_v6 }
 0x315   :  { %v1070_v44 = vpop.eup %1069 }
 0x316   :  { %v1072_v7 = vpop.eup %1071  ;;  %v736_v8 = vadd.f32 1.0, %v1070_v44 }
 0x317   :  { %v1074_v9 = vpop.eup %1073  ;;  %v738_v10 = vadd.f32 1.0, %v1072_v7 }
 0x318   :  { %v1076_v11 = vpop.eup %1075  ;;  %1077 = vrcp.f32 %v736_v8  ;;  %v737_v12 = vadd.f32 1.0, %v1074_v9 }
 0x319   :  { %1079 = vrcp.f32 %v738_v10  ;;  %v739_v13 = vadd.f32 1.0, %v1076_v11 }
 0x31a   :  { %1081 = vrcp.f32 %v737_v12 }
 0x31b   :  { %1083 = vrcp.f32 %v739_v13 }
 0x322   :  { %v1078_v15 = vpop.eup %1077 }
 0x323   :  { %v1080_v16 = vpop.eup %1079  ;;  %757 = vst [vmem:[#allocation2] sm:$0xff] %v1078_v15 }
 0x324   :  { %v1082_v17 = vpop.eup %1081  ;;  %759 = vst [vmem:[#allocation2 + $0x10] sm:$0xff] %v1080_v16  ;;  %v814_v18 = vpop.f32.mrb[4].mxu0 }
 0x325   :  { %v1084_v20 = vpop.eup %1083  ;;  %758 = vst [vmem:[#allocation2 + $0x8] sm:$0xff] %v1082_v17  ;;  %v815_v21 = vpop.f32.mrb[5].mxu0 }
 0x326   :  { %760 = vst [vmem:[#allocation2 + $0x18] sm:$0xff] %v1084_v20  ;;  %v816_v22 = vadd.f32 %v815_v21, %v814_v18 }
 0x328   :  { %v712_v23 = vadd.f32 %v816_v22, %v424_v19 }
 0x32a   :  { %v721_v26 = vsub.f32 0.0, %v712_v23 }
 0x32c   :  { %v734_v27 = vmul.f32 1.442695, %v721_v26 }
 0x32e   :  { %1085 = vpow2.f32 %v734_v27 }
 0x338   :  { %v1086_v28 = vpop.eup %1085 }
 0x339   :  { %v742_v29 = vadd.f32 1.0, %v1086_v28 }
 0x33b   :  { %1087 = vrcp.f32 %v742_v29 }
 0x344   :  { %v640_v31 = vpop.f32.mrb[2].mxu1 }
 0x345   :  { %v1088_v32 = vpop.eup %1087  ;;  %v641_v33 = vadd.f32 %v640_v31, %v416_v54  ;;  %v642_v34 = vpop.f32.mrb[3].mxu1 }
 0x346   :  { %764 = vst.msk [vmem:[#allocation2 + $0x30] sm:$0xff] %vm763_vm5, %v1088_v32  ;;  %v643_v36 = vadd.f32 %v642_v34, %v420_v30 }
 0x347   :  { %v719_v37 = vsub.f32 0.0, %v641_v33 }
 0x348   :  { %v720_v38 = vsub.f32 0.0, %v643_v36 }
 0x349   :  { %v730_v39 = vmul.f32 1.442695, %v719_v37 }
 0x34a   :  { %v732_v43 = vmul.f32 1.442695, %v720_v38 }
 0x34b   :  { %1089 = vpow2.f32 %v730_v39 }
 0x34c   :  { %1091 = vpow2.f32 %v732_v43 }
 0x355   :  { %v1090_v25 = vpop.eup %1089 }
 0x356   :  { %v1092_v24 = vpop.eup %1091  ;;  %v740_v45 = vadd.f32 1.0, %v1090_v25 }
 0x357   :  { %v741_v46 = vadd.f32 1.0, %v1092_v24 }
 0x358   :  { %1093 = vrcp.f32 %v740_v45 }
 0x359   :  { %1095 = vrcp.f32 %v741_v46 }
 0x362   :  { %v1094_v41 = vpop.eup %1093 }
 0x363   :  { %v1096_v47 = vpop.eup %1095  ;;  %761 = vst [vmem:[#allocation2 + $0x20] sm:$0xff] %v1094_v41 }
 0x364   :  { %762 = vst [vmem:[#allocation2 + $0x28] sm:$0xff] %v1096_v47 }
 0x365   :  { %1108 = shalt.err (!%p1105_p4)
}
 0x366   :  { %s1109_s26 = scalar_lea.hbm %s1971_s5, 896 }
 0x367   :  { %p1110_p5 = scmp.ne.s32.totalorder %s1971_s5, %s1109_s26  ;;  %p1113_p6 = scmp.lt.u32.totalorder %s1109_s26, %s1971_s5 }
 0x369   :  { %p1115_p7 = pnand %p1113_p6, %p1110_p5 }
 0x36b   :  { %1118 = shalt.err (!%p1115_p7)
}
 0x36c   :  { %774 = dma.vmem_to_hbm [thread:$0]  %s772_s4, 896, %s1971_s5, [#allocation3]  }
 0x36d   :  { %1119 = dma.done.wait [#allocation3], 896  }
 0x36e   :  { %1120 = vsyncadd [#allocation3], 4294966400 }
 0x36f   :  { %778 = vsyncpa [#allocation3], 1 }

</bundles_post_ra>
